<compile_context>
chip_gen: v5e
topology: v5e:2x2
jax: 0.10.0
libtpu: 0.0.40
codegen_flags: <defaults>
</compile_context>

<pallas_src>
import jax
import jax.numpy as jnp
from jax import lax
from jax.experimental import pallas as pl
from jax.experimental.pallas import tpu as pltpu


_LANE = 128
_SUBLANE = 8


def _round_up(x, m):
    return (x + m - 1) // m * m


def _lovasz_kernel(gts_ref, packed_ref, out_ref, cum_ref, acc_ref):
    """One [Cpad, TP] tile of the per-class (descending-error) sorted packed array.

    Carries the per-class running foreground count (cum_ref) and the per-class
    running err*grad accumulator (acc_ref) across grid steps; finalizes the
    mean over present classes on the last step.
    """
    i = pl.program_id(0)
    n = pl.num_programs(0)

    @pl.when(i == 0)
    def _init():
        cum_ref[...] = jnp.zeros_like(cum_ref)
        acc_ref[...] = jnp.zeros_like(acc_ref)

    # Decode: the mantissa LSB holds fg (exact); masking it off restores err to
    # within 1 ulp of the original |fg - p| (<= 2^-23 relative, negligible).
    bits = pltpu.bitcast(packed_ref[...], jnp.int32)        # [Cpad, TP]
    fg = (bits & jnp.int32(1)).astype(jnp.float32)          # {0, 1}
    err = pltpu.bitcast(bits & jnp.int32(-2), jnp.float32)  # sorted descending per class

    gts = gts_ref[...]                                      # [Cpad, 1] total fg per class
    C, TP = fg.shape

    col = lax.broadcasted_iota(jnp.int32, (C, TP), 1)

    # Within-tile inclusive prefix sum of fg along lanes (Hillis-Steele log-step scan):
    # O(TP log TP) VPU/XLU work, no [TP, TP] matrices, no MXU involvement.
    cs = fg
    shift = 1
    while shift < TP:
        rolled = pltpu.roll(cs, shift=shift, axis=1)        # rolled[:, j] = cs[:, j - shift]
        cs = cs + jnp.where(col >= shift, rolled, 0.0)
        shift *= 2

    cum = cum_ref[...] + cs                 # global inclusive cumsum of fg
    prev_cum = cum - fg                     # global exclusive cumsum of fg

    pos = (col + i * TP + 1).astype(jnp.float32)            # 1-based global position
    prev_pos = pos - 1.0

    # Jaccard loss value at position j and j-1 (note cumsum(1 - fg) == pos - cum).
    inter = gts - cum
    union = gts + (pos - cum)               # >= 1 everywhere
    jac = 1.0 - inter / union

    prev_inter = gts - prev_cum
    prev_union = gts + (prev_pos - prev_cum)
    prev_jac = 1.0 - prev_inter / prev_union
    # lovasz_grad: grad[0] = jac[0]  ->  force prev_jac to 0 at the global first
    # position (also guards the 0/0 there for absent classes).
    is_global_first = jnp.logical_and(col == 0, i == 0)
    prev_jac = jnp.where(is_global_first, 0.0, prev_jac)

    grad = jac - prev_jac                   # this tile's slice of lovasz_grad(fg_sorted)

    acc_ref[...] += jnp.sum(err * grad, axis=-1, keepdims=True)
    cum_ref[...] = cum[:, TP - 1:TP]        # carry = last column of inclusive cumsum

    @pl.when(i == n - 1)
    def _finalize():
        # classes='present': average only over classes with at least one fg pixel.
        per_class = acc_ref[...]                             # [Cpad, 1]
        present = (gts > 0.0).astype(jnp.float32)            # [Cpad, 1]
        num = jnp.sum(per_class * present, axis=0, keepdims=True)
        den = jnp.sum(present, axis=0, keepdims=True)
        # NB: if no class is present the PyTorch reference yields NaN (mean over
        # empty); we return 0.0 instead.
        out_ref[...] = num / jnp.maximum(den, 1.0)


def lovasz_softmax_pallas(probas, labels, ignore=None, *, tile_p=8192):
    """probas: (B, C, H, W) float, labels: (B, H, W) int. Returns scalar float32 loss."""
    B, C, H, W = probas.shape
    P = B * H * W

    # Build class-major [C, P] tensors directly (no narrow [P, C] intermediates).
    pr = jnp.transpose(probas.astype(jnp.float32), (1, 0, 2, 3)).reshape(C, P)
    lb = labels.reshape(P)
    fg_bool = lb[None, :] == jnp.arange(C, dtype=lb.dtype)[:, None]
    if ignore is not None:
        # Masked pixels get zero error and zero foreground: they sort to the tail and
        # contribute nothing, which matches removing them (except the all-ignored case,
        # where PyTorch would produce NaN and we return 0).
        valid = (lb != ignore)[None, :]
        fg_bool = jnp.logical_and(fg_bool, valid)
    fg = fg_bool.astype(jnp.float32)
    errors = jnp.abs(fg - pr)
    if ignore is not None:
        errors = errors * valid.astype(jnp.float32)

    # Total foreground per class (used for 'present' mask and the Jaccard formula).
    gts = jnp.sum(fg, axis=-1)                               # [C]

    # Pack fg into the mantissa LSB of err: one f32 array carries both through the
    # sort and the kernel (halves sort payload + kernel HBM reads; <=1 ulp err skew).
    err_bits = lax.bitcast_convert_type(errors, jnp.int32)
    packed = lax.bitcast_convert_type(
        (err_bits & jnp.int32(-2)) | fg_bool.astype(jnp.int32), jnp.float32)

    # Pad classes to the f32 sublane tile (8) and pixels to a lane-tile multiple.
    Cpad = _round_up(max(C, 1), _SUBLANE)
    TP = max(_LANE, min(_round_up(tile_p, _LANE), _round_up(P, _LANE)))
    # Keep the double-buffered packed tile comfortably inside VMEM for any C.
    vmem_cap = max(_LANE, (4 * 1024 * 1024) // (Cpad * 4 * 2) // _LANE * _LANE)
    TP = min(TP, vmem_cap)
    Ppad = _round_up(P, TP)

    packed = jnp.pad(packed, ((0, Cpad - C), (0, Ppad - P)))
    gts = jnp.pad(gts, (0, Cpad - C)).reshape(Cpad, 1)

    # Glue: per-class descending sort by error (fg rides along in the mantissa LSB,
    # so this is a single-operand sort -- no argsort + take_along_axis gathers).
    # TODO(synk): the sort itself has no Pallas TPU equivalent and stays in XLA;
    # everything downstream runs in the kernel.
    packed_sorted = -lax.sort(-packed, dimension=-1)

    num_tiles = Ppad // TP

    out = pl.pallas_call(
        _lovasz_kernel,
        out_shape=jax.ShapeDtypeStruct((1, 1), jnp.float32),
        grid_spec=pltpu.PrefetchScalarGridSpec(
            num_scalar_prefetch=0,
            grid=(num_tiles,),
            in_specs=[
                pl.BlockSpec((Cpad, 1), lambda i: (0, 0)),    # gts (resident)
                pl.BlockSpec((Cpad, TP), lambda i: (0, i)),   # packed (err|fg) tile
            ],
            out_specs=pl.BlockSpec((1, 1), lambda i: (0, 0)),
            scratch_shapes=[
                pltpu.VMEM((Cpad, 1), jnp.float32),           # running cum_fg carry
                pltpu.VMEM((Cpad, 1), jnp.float32),           # running err*grad accumulator
            ],
        ),
        compiler_params=pltpu.CompilerParams(
            dimension_semantics=("arbitrary",),               # sequential carried scan over P
        ),
    )(gts, packed_sorted)
    return out[0, 0]


class LovaszLossPallas:
    """Pallas equivalent of the PyTorch Lovasz_loss module (no parameters)."""

    def __init__(self, ignore=None):
        self.ignore = ignore

    def __call__(self, probas, labels):
        return lovasz_softmax_pallas(probas, labels, ignore=self.ignore)


def _lovasz_softmax_reference(probas, labels, ignore=None):
    """Plain-JAX reference mirroring lovasz_softmax (classes='present', per_image=False)."""
    B, C, H, W = probas.shape
    P = B * H * W
    pr = jnp.transpose(probas.astype(jnp.float32), (1, 0, 2, 3)).reshape(C, P)
    lb = labels.reshape(P)
    fg = (lb[None, :] == jnp.arange(C, dtype=lb.dtype)[:, None]).astype(jnp.float32)
    err = jnp.abs(fg - pr)
    if ignore is not None:
        valid = (lb != ignore)[None, :].astype(jnp.float32)
        fg = fg * valid
        err = err * valid
    order = jnp.argsort(-err, axis=-1)
    err_s = jnp.take_along_axis(err, order, axis=-1)
    fg_s = jnp.take_along_axis(fg, order, axis=-1)
    gts = jnp.sum(fg_s, axis=-1, keepdims=True)
    inter = gts - jnp.cumsum(fg_s, axis=-1)
    union = gts + jnp.cumsum(1.0 - fg_s, axis=-1)
    jac = 1.0 - inter / union
    grad = jnp.concatenate([jac[:, :1], jac[:, 1:] - jac[:, :-1]], axis=-1)
    per_class = jnp.sum(err_s * grad, axis=-1)
    present = gts[:, 0] > 0
    den = jnp.maximum(jnp.sum(present.astype(jnp.float32)), 1.0)
    return jnp.sum(jnp.where(present, per_class, 0.0)) / den


if __name__ == "__main__":
    key = jax.random.PRNGKey(0)
    k1, k2 = jax.random.split(key)

    B, C, H, W = 2, 4, 16, 16
    logits = jax.random.normal(k1, (B, C, H, W), dtype=jnp.float32)
    probas = jax.nn.softmax(logits, axis=1)                   # class probabilities, NCHW
    labels = jax.random.randint(k2, (B, H, W), 0, C, dtype=jnp.int32)

    loss_fn = LovaszLossPallas(ignore=None)
    loss = jax.block_until_ready(loss_fn(probas, labels))
    ref = jax.block_until_ready(_lovasz_softmax_reference(probas, labels, ignore=None))

    assert jnp.isfinite(loss), "loss is not finite"
    assert jnp.abs(loss - ref) < 1e-4, (float(loss), float(ref))
    print("KERNEL_OK")
</pallas_src>

<mosaic_0001>
module attributes {stable_mosaic.version = 11 : i64} {
  func.func @_lovasz_kernel(%arg0: i32, %arg1: memref<8x1xf32, #tpu.memory_space<vmem>>, %arg2: memref<8x512xf32, #tpu.memory_space<vmem>>, %arg3: memref<1x1xf32, #tpu.memory_space<vmem>>, %arg4: memref<8x1xf32, #tpu.memory_space<vmem>>, %arg5: memref<8x1xf32, #tpu.memory_space<vmem>>) attributes {dimension_semantics = [#tpu.dimension_semantics<arbitrary>], iteration_bounds = array<i64: 1>, scalar_prefetch = 0 : i64, scratch_operands = 2 : i64, tpu.core_type = #tpu.core_type<tc>, window_params = [{pipeline_mode = #tpu.pipeline_mode<synchronous>, transform_indices = @transform_0, window_bounds = array<i64: 8, 1>}, {transform_indices = @transform_1, window_bounds = array<i64: 8, 512>}, {pipeline_mode = #tpu.pipeline_mode<synchronous>, transform_indices = @transform_2, window_bounds = array<i64: 1, 1>}]} {
    %c0_i32 = arith.constant 0 : i32
    %0 = arith.cmpi eq, %arg0, %c0_i32 : i32
    %1 = arith.extui %0 : i1 to i32
    %c0_i32_0 = arith.constant 0 : i32
    %2 = arith.cmpi ne, %1, %c0_i32_0 : i32
    scf.if %2 {
      %cst_40 = arith.constant 0.000000e+00 : f32
      %114 = vector.broadcast %cst_40 : f32 to vector<8x1xf32>
      %c0_41 = arith.constant 0 : index
      %c0_42 = arith.constant 0 : index
      %115 = vector.load %arg4[%c0_41, %c0_42] : memref<8x1xf32, #tpu.memory_space<vmem>>, vector<8x1xf32>
      tpu.vector_store %arg4[%c0_41, %c0_42], %114 {strides = array<i32>} : memref<8x1xf32, #tpu.memory_space<vmem>>, vector<8x1xf32>,
      %cst_43 = arith.constant 0.000000e+00 : f32
      %116 = vector.broadcast %cst_43 : f32 to vector<8x1xf32>
      %c0_44 = arith.constant 0 : index
      %c0_45 = arith.constant 0 : index
      %117 = vector.load %arg5[%c0_44, %c0_45] : memref<8x1xf32, #tpu.memory_space<vmem>>, vector<8x1xf32>
      tpu.vector_store %arg5[%c0_44, %c0_45], %116 {strides = array<i32>} : memref<8x1xf32, #tpu.memory_space<vmem>>, vector<8x1xf32>,
    } else {
    }
    %c0 = arith.constant 0 : index
    %c0_1 = arith.constant 0 : index
    %3 = vector.load %arg2[%c0, %c0_1] : memref<8x512xf32, #tpu.memory_space<vmem>>, vector<8x512xf32>
    %4 = tpu.bitcast %3 : vector<8x512xf32> -> vector<8x512xi32>
    %c1_i32 = arith.constant 1 : i32
    %5 = vector.broadcast %c1_i32 : i32 to vector<8x512xi32>
    %6 = arith.andi %4, %5 : vector<8x512xi32>
    %7 = arith.sitofp %6 : vector<8x512xi32> to vector<8x512xf32>
    %c-2_i32 = arith.constant -2 : i32
    %8 = vector.broadcast %c-2_i32 : i32 to vector<8x512xi32>
    %9 = arith.andi %4, %8 : vector<8x512xi32>
    %10 = tpu.bitcast %9 : vector<8x512xi32> -> vector<8x512xf32>
    %c0_2 = arith.constant 0 : index
    %c0_3 = arith.constant 0 : index
    %11 = vector.load %arg1[%c0_2, %c0_3] : memref<8x1xf32, #tpu.memory_space<vmem>>, vector<8x1xf32>
    %12 = tpu.iota {dimensions = array<i32: 1>} : vector<8x512xi32>
    %c1_i32_4 = arith.constant 1 : i32
    %13 = tpu.dynamic_rotate %7 by %c1_i32_4 dim 1 : vector<8x512xf32>, i32 -> vector<8x512xf32>
    %c1_i32_5 = arith.constant 1 : i32
    %14 = vector.broadcast %c1_i32_5 : i32 to vector<8x512xi32>
    %15 = arith.cmpi sge, %12, %14 : vector<8x512xi32>
    %cst = arith.constant 0.000000e+00 : f32
    %16 = vector.broadcast %cst : f32 to vector<8x512xf32>
    %17 = arith.select %15, %13, %16 : vector<8x512xi1>, vector<8x512xf32>
    %18 = arith.addf %7, %17 : vector<8x512xf32>
    %c2_i32 = arith.constant 2 : i32
    %19 = tpu.dynamic_rotate %18 by %c2_i32 dim 1 : vector<8x512xf32>, i32 -> vector<8x512xf32>
    %c2_i32_6 = arith.constant 2 : i32
    %20 = vector.broadcast %c2_i32_6 : i32 to vector<8x512xi32>
    %21 = arith.cmpi sge, %12, %20 : vector<8x512xi32>
    %cst_7 = arith.constant 0.000000e+00 : f32
    %22 = vector.broadcast %cst_7 : f32 to vector<8x512xf32>
    %23 = arith.select %21, %19, %22 : vector<8x512xi1>, vector<8x512xf32>
    %24 = arith.addf %18, %23 : vector<8x512xf32>
    %c4_i32 = arith.constant 4 : i32
    %25 = tpu.dynamic_rotate %24 by %c4_i32 dim 1 : vector<8x512xf32>, i32 -> vector<8x512xf32>
    %c4_i32_8 = arith.constant 4 : i32
    %26 = vector.broadcast %c4_i32_8 : i32 to vector<8x512xi32>
    %27 = arith.cmpi sge, %12, %26 : vector<8x512xi32>
    %cst_9 = arith.constant 0.000000e+00 : f32
    %28 = vector.broadcast %cst_9 : f32 to vector<8x512xf32>
    %29 = arith.select %27, %25, %28 : vector<8x512xi1>, vector<8x512xf32>
    %30 = arith.addf %24, %29 : vector<8x512xf32>
    %c8_i32 = arith.constant 8 : i32
    %31 = tpu.dynamic_rotate %30 by %c8_i32 dim 1 : vector<8x512xf32>, i32 -> vector<8x512xf32>
    %c8_i32_10 = arith.constant 8 : i32
    %32 = vector.broadcast %c8_i32_10 : i32 to vector<8x512xi32>
    %33 = arith.cmpi sge, %12, %32 : vector<8x512xi32>
    %cst_11 = arith.constant 0.000000e+00 : f32
    %34 = vector.broadcast %cst_11 : f32 to vector<8x512xf32>
    %35 = arith.select %33, %31, %34 : vector<8x512xi1>, vector<8x512xf32>
    %36 = arith.addf %30, %35 : vector<8x512xf32>
    %c16_i32 = arith.constant 16 : i32
    %37 = tpu.dynamic_rotate %36 by %c16_i32 dim 1 : vector<8x512xf32>, i32 -> vector<8x512xf32>
    %c16_i32_12 = arith.constant 16 : i32
    %38 = vector.broadcast %c16_i32_12 : i32 to vector<8x512xi32>
    %39 = arith.cmpi sge, %12, %38 : vector<8x512xi32>
    %cst_13 = arith.constant 0.000000e+00 : f32
    %40 = vector.broadcast %cst_13 : f32 to vector<8x512xf32>
    %41 = arith.select %39, %37, %40 : vector<8x512xi1>, vector<8x512xf32>
    %42 = arith.addf %36, %41 : vector<8x512xf32>
    %c32_i32 = arith.constant 32 : i32
    %43 = tpu.dynamic_rotate %42 by %c32_i32 dim 1 : vector<8x512xf32>, i32 -> vector<8x512xf32>
    %c32_i32_14 = arith.constant 32 : i32
    %44 = vector.broadcast %c32_i32_14 : i32 to vector<8x512xi32>
    %45 = arith.cmpi sge, %12, %44 : vector<8x512xi32>
    %cst_15 = arith.constant 0.000000e+00 : f32
    %46 = vector.broadcast %cst_15 : f32 to vector<8x512xf32>
    %47 = arith.select %45, %43, %46 : vector<8x512xi1>, vector<8x512xf32>
    %48 = arith.addf %42, %47 : vector<8x512xf32>
    %c64_i32 = arith.constant 64 : i32
    %49 = tpu.dynamic_rotate %48 by %c64_i32 dim 1 : vector<8x512xf32>, i32 -> vector<8x512xf32>
    %c64_i32_16 = arith.constant 64 : i32
    %50 = vector.broadcast %c64_i32_16 : i32 to vector<8x512xi32>
    %51 = arith.cmpi sge, %12, %50 : vector<8x512xi32>
    %cst_17 = arith.constant 0.000000e+00 : f32
    %52 = vector.broadcast %cst_17 : f32 to vector<8x512xf32>
    %53 = arith.select %51, %49, %52 : vector<8x512xi1>, vector<8x512xf32>
    %54 = arith.addf %48, %53 : vector<8x512xf32>
    %c128_i32 = arith.constant 128 : i32
    %55 = tpu.dynamic_rotate %54 by %c128_i32 dim 1 : vector<8x512xf32>, i32 -> vector<8x512xf32>
    %c128_i32_18 = arith.constant 128 : i32
    %56 = vector.broadcast %c128_i32_18 : i32 to vector<8x512xi32>
    %57 = arith.cmpi sge, %12, %56 : vector<8x512xi32>
    %cst_19 = arith.constant 0.000000e+00 : f32
    %58 = vector.broadcast %cst_19 : f32 to vector<8x512xf32>
    %59 = arith.select %57, %55, %58 : vector<8x512xi1>, vector<8x512xf32>
    %60 = arith.addf %54, %59 : vector<8x512xf32>
    %c256_i32 = arith.constant 256 : i32
    %61 = tpu.dynamic_rotate %60 by %c256_i32 dim 1 : vector<8x512xf32>, i32 -> vector<8x512xf32>
    %c256_i32_20 = arith.constant 256 : i32
    %62 = vector.broadcast %c256_i32_20 : i32 to vector<8x512xi32>
    %63 = arith.cmpi sge, %12, %62 : vector<8x512xi32>
    %cst_21 = arith.constant 0.000000e+00 : f32
    %64 = vector.broadcast %cst_21 : f32 to vector<8x512xf32>
    %65 = arith.select %63, %61, %64 : vector<8x512xi1>, vector<8x512xf32>
    %66 = arith.addf %60, %65 : vector<8x512xf32>
    %c0_22 = arith.constant 0 : index
    %c0_23 = arith.constant 0 : index
    %67 = vector.load %arg4[%c0_22, %c0_23] : memref<8x1xf32, #tpu.memory_space<vmem>>, vector<8x1xf32>
    %68 = vector.broadcast %67 : vector<8x1xf32> to vector<8x512xf32>
    %69 = arith.addf %68, %66 : vector<8x512xf32>
    %70 = arith.subf %69, %7 : vector<8x512xf32>
    %c512_i32 = arith.constant 512 : i32
    %71 = arith.muli %arg0, %c512_i32 : i32
    %72 = vector.broadcast %71 : i32 to vector<8x512xi32>
    %73 = arith.addi %12, %72 : vector<8x512xi32>
    %c1_i32_24 = arith.constant 1 : i32
    %74 = vector.broadcast %c1_i32_24 : i32 to vector<8x512xi32>
    %75 = arith.addi %73, %74 : vector<8x512xi32>
    %76 = arith.sitofp %75 : vector<8x512xi32> to vector<8x512xf32>
    %cst_25 = arith.constant 1.000000e+00 : f32
    %77 = vector.broadcast %cst_25 : f32 to vector<8x512xf32>
    %78 = arith.subf %76, %77 : vector<8x512xf32>
    %79 = vector.broadcast %11 : vector<8x1xf32> to vector<8x512xf32>
    %80 = arith.subf %79, %69 : vector<8x512xf32>
    %81 = arith.subf %76, %69 : vector<8x512xf32>
    %82 = vector.broadcast %11 : vector<8x1xf32> to vector<8x512xf32>
    %83 = arith.addf %82, %81 : vector<8x512xf32>
    %84 = arith.divf %80, %83 : vector<8x512xf32>
    %cst_26 = arith.constant 1.000000e+00 : f32
    %85 = vector.broadcast %cst_26 : f32 to vector<8x512xf32>
    %86 = arith.subf %85, %84 : vector<8x512xf32>
    %87 = vector.broadcast %11 : vector<8x1xf32> to vector<8x512xf32>
    %88 = arith.subf %87, %70 : vector<8x512xf32>
    %89 = arith.subf %78, %70 : vector<8x512xf32>
    %90 = vector.broadcast %11 : vector<8x1xf32> to vector<8x512xf32>
    %91 = arith.addf %90, %89 : vector<8x512xf32>
    %92 = arith.divf %88, %91 : vector<8x512xf32>
    %cst_27 = arith.constant 1.000000e+00 : f32
    %93 = vector.broadcast %cst_27 : f32 to vector<8x512xf32>
    %94 = arith.subf %93, %92 : vector<8x512xf32>
    %c0_i32_28 = arith.constant 0 : i32
    %95 = vector.broadcast %c0_i32_28 : i32 to vector<8x512xi32>
    %96 = arith.cmpi eq, %12, %95 : vector<8x512xi32>
    %c0_i32_29 = arith.constant 0 : i32
    %97 = arith.cmpi eq, %arg0, %c0_i32_29 : i32
    %98 = vector.broadcast %97 : i1 to vector<8x512xi1>
    %99 = arith.andi %96, %98 : vector<8x512xi1>
    %cst_30 = arith.constant 0.000000e+00 : f32
    %100 = vector.broadcast %cst_30 : f32 to vector<8x512xf32>
    %101 = arith.select %99, %100, %94 : vector<8x512xi1>, vector<8x512xf32>
    %102 = arith.subf %86, %101 : vector<8x512xf32>
    %c0_31 = arith.constant 0 : index
    %c0_32 = arith.constant 0 : index
    %103 = vector.load %arg5[%c0_31, %c0_32] : memref<8x1xf32, #tpu.memory_space<vmem>>, vector<8x1xf32>
    %104 = arith.mulf %10, %102 : vector<8x512xf32>
    %cst_33 = arith.constant dense<0.000000e+00> : vector<8xf32>
    %105 = vector.multi_reduction <add>, %104, %cst_33 [1] : vector<8x512xf32> to vector<8xf32>
    %106 = vector.shape_cast %105 : vector<8xf32> to vector<8x1xf32>
    %107 = arith.addf %103, %106 : vector<8x1xf32>
    %c0_34 = arith.constant 0 : index
    %c0_35 = arith.constant 0 : index
    %108 = vector.load %arg5[%c0_34, %c0_35] : memref<8x1xf32, #tpu.memory_space<vmem>>, vector<8x1xf32>
    tpu.vector_store %arg5[%c0_34, %c0_35], %107 {strides = array<i32>} : memref<8x1xf32, #tpu.memory_space<vmem>>, vector<8x1xf32>,
    %109 = vector.extract_strided_slice %69 {offsets = [0, 511], sizes = [8, 1], strides = [1, 1]} : vector<8x512xf32> to vector<8x1xf32>
    %c0_36 = arith.constant 0 : index
    %c0_37 = arith.constant 0 : index
    %110 = vector.load %arg4[%c0_36, %c0_37] : memref<8x1xf32, #tpu.memory_space<vmem>>, vector<8x1xf32>
    tpu.vector_store %arg4[%c0_36, %c0_37], %109 {strides = array<i32>} : memref<8x1xf32, #tpu.memory_space<vmem>>, vector<8x1xf32>,
    %c0_i32_38 = arith.constant 0 : i32
    %111 = arith.cmpi eq, %arg0, %c0_i32_38 : i32
    %112 = arith.extui %111 : i1 to i32
    %c0_i32_39 = arith.constant 0 : i32
    %113 = arith.cmpi ne, %112, %c0_i32_39 : i32
    scf.if %113 {
      %c0_40 = arith.constant 0 : index
      %c0_41 = arith.constant 0 : index
      %114 = vector.load %arg5[%c0_40, %c0_41] : memref<8x1xf32, #tpu.memory_space<vmem>>, vector<8x1xf32>
      %cst_42 = arith.constant 0.000000e+00 : f32
      %115 = vector.broadcast %cst_42 : f32 to vector<8x1xf32>
      %116 = arith.cmpf ogt, %11, %115 : vector<8x1xf32>
      %117 = arith.extui %116 : vector<8x1xi1> to vector<8x1xi32>
      %118 = arith.sitofp %117 : vector<8x1xi32> to vector<8x1xf32>
      %119 = arith.mulf %114, %118 : vector<8x1xf32>
      %cst_43 = arith.constant dense<0.000000e+00> : vector<1xf32>
      %120 = vector.multi_reduction <add>, %119, %cst_43 [0] : vector<8x1xf32> to vector<1xf32>
      %121 = vector.shape_cast %120 : vector<1xf32> to vector<1x1xf32>
      %cst_44 = arith.constant dense<0.000000e+00> : vector<1xf32>
      %122 = vector.multi_reduction <add>, %118, %cst_44 [0] : vector<8x1xf32> to vector<1xf32>
      %123 = vector.shape_cast %122 : vector<1xf32> to vector<1x1xf32>
      %cst_45 = arith.constant 1.000000e+00 : f32
      %124 = vector.broadcast %cst_45 : f32 to vector<1x1xf32>
      %125 = arith.maximumf %123, %124 : vector<1x1xf32>
      %126 = arith.divf %121, %125 : vector<1x1xf32>
      %c0_46 = arith.constant 0 : index
      %c0_47 = arith.constant 0 : index
      %127 = vector.load %arg3[%c0_46, %c0_47] : memref<1x1xf32, #tpu.memory_space<vmem>>, vector<1x1xf32>
      tpu.vector_store %arg3[%c0_46, %c0_47], %126 {strides = array<i32>} : memref<1x1xf32, #tpu.memory_space<vmem>>, vector<1x1xf32>,
    } else {
    }
    return
  }
  func.func @transform_0(%arg0: i32) -> (i32, i32) {
    %c0_i32 = arith.constant 0 : i32
    %c0_i32_0 = arith.constant 0 : i32
    %c0_i32_1 = arith.constant 0 : i32
    return %c0_i32, %c0_i32_0 : i32, i32
  }
  func.func @transform_1(%arg0: i32) -> (i32, i32) {
    %c0_i32 = arith.constant 0 : i32
    %c0_i32_0 = arith.constant 0 : i32
    return %c0_i32, %arg0 : i32, i32
  }
  func.func @transform_2(%arg0: i32) -> (i32, i32) {
    %c0_i32 = arith.constant 0 : i32
    %c0_i32_0 = arith.constant 0 : i32
    %c0_i32_1 = arith.constant 0 : i32
    return %c0_i32, %c0_i32_0 : i32, i32
  }
}

</mosaic_0001>

<bundles_post_ra>
// kernel: tpu_custom_call.1
= control target key start
LH: loop header
LB: loop body
LE: loop exit
PB: predicated region body
PF: predicated region fallthrough
CT: control target
= control target key end

     0   :  { %7 = vsyncpa [#allocation5], 0  ;;  %s990_s0 = inlined_call_operand.vmem [shape: f32[8,1], index: 0, kind: input, shape index: {}]   ;;  %s991_s1 = inlined_call_operand.hbm [shape: f32[8,512], index: 1, kind: input, shape index: {}]   ;;  %s992_s2 = inlined_call_operand.hbm [shape: f32[1,1], index: 2, kind: output, shape index: {}]  }
   0x1   :  { %8 = vsyncpa [#allocation6], 0  ;;  %s16_s11 = sshll.u32 %s991_s1, 4  ;;  %s634_s12 = smov [#allocation4]   ;;  %s17_s11 = int_to_ptr.hbm [resolvable:$true] %s16_s11 }
   0x2   :  { %s18_s13 = sshll.u32 %s634_s12, 4  ;;  %s19_s13 = int_to_ptr.vmem [resolvable:$true] %s18_s13 }
   0x3   :  { %21 = dma.hbm_to_vmem [thread:$0]  %s17_s11, 512, %s19_s13, [#allocation5]  }
   0x4   :  { %630 = dma.done.wait [#allocation5], 512  }
   0x5   :  { %631 = vsyncadd [#allocation5], 4294966784  ;;  %v663_v0 = vld [vmem:[#allocation4 + $0x10] sm:$0xff]  ;;  %v665_v1 = vld [vmem:[#allocation4] sm:$0xff]  ;;  %s635_s1 = smov 1   ;;  %v58_v12 = vlaneseq  ;;  %s636_s14 = smov 2  }
   0x6   :  { %v43_v2 = vand.u32 1, %v663_v0  ;;  %v41_v3 = vand.u32 1, %v665_v1  ;;  %v669_v4 = vld [vmem:[#allocation4 + $0x8] sm:$0xff]  ;;  %v671_v5 = vld [vmem:[#allocation4 + $0x18] sm:$0xff]  ;;  %s637_s15 = smov 4   ;;  %s638_s16 = smov 8  }
   0x7   :  { %v42_v8 = vand.u32 1, %v669_v4  ;;  %v44_v9 = vand.u32 1, %v671_v5  ;;  %v691_v15 = vand.u32 127, %v58_v12  ;;  %s639_s17 = smov 16   ;;  %s640_s18 = smov 32   ;;  %vm30_vm10 = vcmask 7168  }
   0x8   :  { %v673_v6 = vcvt.s32.f32 %v43_v2  ;;  %v675_v7 = vcvt.s32.f32 %v41_v3  ;;  %s643_s21 = smov 64   ;;  %s535_s25 = sshll.u32 %s992_s2, 4  ;;  %s536_s25 = int_to_ptr.hbm [resolvable:$true] %s535_s25 }
   0x9   :  { %v683_v10 = vcvt.s32.f32 %v42_v8  ;;  %v685_v11 = vcvt.s32.f32 %v44_v9  ;;  %vm71_vm0 = vcmp.lt.s32.totalorder %v691_v15, 1  ;;  %vm76_vm1 = vcmp.ge.s32.totalorder %v691_v15, 1 }
   0xa   :  { %67 = vrot.lane.b32.xlu1 %v673_v6, %s635_s1  ;;  %63 = vrot.lane.b32.xlu0 %v675_v7, %s635_s1  ;;  %vm96_vm2 = vcmp.lt.s32.totalorder %v691_v15, 2  ;;  %vm101_vm3 = vcmp.ge.s32.totalorder %v691_v15, 2  ;;  %vm121_vm4 = vcmp.lt.s32.totalorder %v691_v15, 4  ;;  %vm126_vm5 = vcmp.ge.s32.totalorder %v691_v15, 4 }
   0xb   :  { %vm146_vm6 = vcmp.lt.s32.totalorder %v691_v15, 8  ;;  %vm151_vm7 = vcmp.ge.s32.totalorder %v691_v15, 8  ;;  %vm171_vm8 = vcmp.lt.s32.totalorder %v691_v15, 16  ;;  %vm176_vm9 = vcmp.ge.s32.totalorder %v691_v15, 16 }
   0xc   :  { %vm196_vm11 = vcmp.lt.s32.totalorder %v691_v15, 32  ;;  %vm201_vm13 = vcmp.ge.s32.totalorder %v691_v15, 32  ;;  %vm221_vm14 = vcmp.lt.s32.totalorder %v691_v15, 64  ;;  %vm226_vm15 = vcmp.ge.s32.totalorder %v691_v15, 64 }
  0x12   :  { %65 = vrot.lane.b32.xlu1 %v683_v10, %s635_s1  ;;  %69 = vrot.lane.b32.xlu0 %v685_v11, %s635_s1 }
  0x7c   :  { %v68_v13 = vpop.permute.xlu1 %67  ;;  %v64_v14 = vpop.permute.xlu0 %63 }
  0x84   :  { %v66_v16 = vpop.permute.xlu1 %65  ;;  %v70_v17 = vpop.permute.xlu0 %69 }
  0x85   :  { %v73_v18 = vsel %vm71_vm0, %v66_v16, %v68_v13  ;;  %v74_v19 = vsel %vm71_vm0, %v64_v14, %v66_v16  ;;  %v75_v20 = vsel %vm71_vm0, %v70_v17, %v64_v14  ;;  %v72_v25 = vsel %vm71_vm0, %v68_v13, %v70_v17 }
  0x86   :  { %v85_v21 = vadd.f32 %v74_v19, %v683_v10  ;;  %v86_v22 = vadd.f32 %v73_v18, %v673_v6  ;;  %v80_v23 = vsel %vm76_vm1, %v75_v20, 0.0  ;;  %v87_v26 = vadd.f32 %v72_v25, %v685_v11 }
  0x87   :  { %v84_v24 = vadd.f32 %v80_v23, %v675_v7  ;;  %v641_v25 = vmov 0.0  }
  0x88   :  { %92 = vrot.lane.b32.xlu0 %v86_v22, %s636_s14  ;;  %90 = vrot.lane.b32.xlu1 %v85_v21, %s636_s14  ;;  %31 = vst.msk [vmem:[#allocation2] sm:$0xff] %vm30_vm10, %v641_v25 }
  0x89   :  { %88 = vrot.lane.b32.xlu2 %v84_v24, %s636_s14  ;;  %32 = vst.msk [vmem:[#allocation3] sm:$0xff] %vm30_vm10, %v641_v25 }
  0x91   :  { %94 = vrot.lane.b32.xlu2 %v87_v26, %s636_s14 }
  0xe3   :  { %v89_v27 = vpop.permute.xlu2 %88 }
  0xeb   :  { %v95_v28 = vpop.permute.xlu2 %94 }
  0xec   :  { %v100_v29 = vsel %vm96_vm2, %v95_v28, %v89_v27 }
  0xed   :  { %v105_v30 = vsel %vm101_vm3, %v100_v29, 0.0 }
  0xee   :  { %v109_v31 = vadd.f32 %v105_v30, %v84_v24  ;;  %v57_v30 = vld [vmem:[%s990_s0] sm:$0xff]  ;;  %s644_s0 = smov [#allocation7]  }
  0xef   :  { %vm492_vm12 = vcmp.gt.f32.partialorder %v57_v30, 0.0  ;;  %s533_s22 = sshll.u32 %s644_s0, 4  ;;  %s534_s22 = int_to_ptr.vmem [resolvable:$true] %s533_s22 }
  0xf0   :  { %113 = vrot.lane.b32.xlu2 %v109_v31, %s637_s15 }
  0xfa   :  { %v91_v32 = vpop.permute.xlu1 %90  ;;  %v93_v33 = vpop.permute.xlu0 %92 }
  0xfb   :  { %v99_v34 = vsel %vm96_vm2, %v89_v27, %v91_v32  ;;  %v97_v35 = vsel %vm96_vm2, %v93_v33, %v95_v28  ;;  %v98_v36 = vsel %vm96_vm2, %v91_v32, %v93_v33 }
  0xfc   :  { %v110_v37 = vadd.f32 %v99_v34, %v85_v21  ;;  %v111_v38 = vadd.f32 %v98_v36, %v86_v22  ;;  %v112_v39 = vadd.f32 %v97_v35, %v87_v26  ;;  %v642_v26 = vmov 0  }
  0xfd   :  { %561 = vset.pattern.permute.xlu1 %v642_v26  ;;  %562 = vset.pattern.permute.xlu2 %v642_v26 }
  0xfe   :  { %115 = vrot.lane.b32.xlu2 %v110_v37, %s637_s15  ;;  %117 = vrot.lane.b32.xlu1 %v111_v38, %s637_s15 }
  0xff   :  { %119 = vrot.lane.b32.xlu0 %v112_v39, %s637_s15 }
 0x100   :  { %563 = vset.pattern.permute.xlu0 %v642_v26 }
 0x14a   :  { %v114_v40 = vpop.permute.xlu2 %113 }
 0x158   :  { %v116_v41 = vpop.permute.xlu2 %115 }
 0x159   :  { %v124_v51 = vsel %vm121_vm4, %v114_v40, %v116_v41 }
 0x15a   :  { %v135_v52 = vadd.f32 %v124_v51, %v110_v37  ;;  %v282_v51 = vadd.s32 1, %v691_v15 }
 0x170   :  { %v118_v42 = vpop.permute.xlu1 %117 }
 0x171   :  { %v123_v43 = vsel %vm121_vm4, %v116_v41, %v118_v42  ;;  %v120_v44 = vpop.permute.xlu0 %119 }
 0x172   :  { %v136_v45 = vadd.f32 %v123_v43, %v111_v38  ;;  %v122_v46 = vsel %vm121_vm4, %v118_v42, %v120_v44  ;;  %v125_v47 = vsel %vm121_vm4, %v120_v44, %v114_v40  ;;  %v262_v40 = vld [vmem:[#allocation2] sm:$0xff]  ;;  %v60_v43 = vadd.s32 128, %v691_v15 }
 0x173   :  { %v130_v48 = vsel %vm126_vm5, %v125_v47, 0.0  ;;  %v137_v49 = vadd.f32 %v122_v46, %v112_v39 }
 0x174   :  { %v134_v50 = vadd.f32 %v130_v48, %v109_v31  ;;  %142 = vrot.lane.b32.xlu2 %v136_v45, %s638_s16  ;;  %v723_v31 = vsel %vm492_vm12, 1.0, %v641_v25 }
 0x175   :  { %144 = vrot.lane.b32.xlu1 %v137_v49, %s638_s16 }
 0x176   :  { %138 = vrot.lane.b32.xlu0 %v134_v50, %s638_s16 }
 0x17e   :  { %140 = vrot.lane.b32.xlu0 %v135_v52, %s638_s16 }
 0x1ce   :  { %v143_v53 = vpop.permute.xlu2 %142 }
 0x1e7   :  { %v145_v54 = vpop.permute.xlu1 %144 }
 0x1e8   :  { %v147_v55 = vsel %vm146_vm6, %v143_v53, %v145_v54  ;;  %v139_v56 = vpop.permute.xlu0 %138 }
 0x1e9   :  { %v162_v57 = vadd.f32 %v147_v55, %v137_v49  ;;  %v150_v58 = vsel %vm146_vm6, %v145_v54, %v139_v56  ;;  %v62_v54 = vadd.s32 384, %v691_v15 }
 0x1ea   :  { %v155_v59 = vsel %vm151_vm7, %v150_v58, 0.0 }
 0x1eb   :  { %v159_v60 = vadd.f32 %v155_v59, %v134_v50  ;;  %169 = vrot.lane.b32.xlu2 %v162_v57, %s639_s17 }
 0x1ed   :  { %163 = vrot.lane.b32.xlu1 %v159_v60, %s639_s17 }
 0x1f0   :  { %v141_v61 = vpop.permute.xlu0 %140 }
 0x1f1   :  { %v148_v62 = vsel %vm146_vm6, %v141_v61, %v143_v53  ;;  %v149_v63 = vsel %vm146_vm6, %v139_v56, %v141_v61  ;;  %v61_v53 = vadd.s32 256, %v691_v15  ;;  %v286_v56 = vcvt.s32.f32 %v282_v51 }
 0x1f2   :  { %v160_v2 = vadd.f32 %v149_v63, %v135_v52  ;;  %v161_v3 = vadd.f32 %v148_v62, %v136_v45  ;;  %v283_v52 = vadd.s32 1, %v60_v43 }
 0x1f4   :  { %167 = vrot.lane.b32.xlu0 %v161_v3, %s639_s17 }
 0x1f5   :  { %165 = vrot.lane.b32.xlu1 %v160_v2, %s639_s17 }
 0x245   :  { %v170_v8 = vpop.permute.xlu2 %169 }
 0x25f   :  { %v164_v9 = vpop.permute.xlu1 %163 }
 0x260   :  { %v175_v12 = vsel %vm171_vm8, %v170_v8, %v164_v9 }
 0x261   :  { %v180_v13 = vsel %vm176_vm9, %v175_v12, 0.0 }
 0x262   :  { %v184_v14 = vadd.f32 %v180_v13, %v159_v60 }
 0x264   :  { %188 = vrot.lane.b32.xlu2 %v184_v14, %s640_s18 }
 0x266   :  { %v168_v16 = vpop.permute.xlu0 %167 }
 0x267   :  { %v172_v17 = vsel %vm171_vm8, %v168_v16, %v170_v8  ;;  %v166_v18 = vpop.permute.xlu1 %165  ;;  %v284_v8 = vadd.s32 1, %v61_v53 }
 0x268   :  { %v187_v19 = vadd.f32 %v172_v17, %v162_v57  ;;  %v173_v20 = vsel %vm171_vm8, %v166_v18, %v168_v16  ;;  %v174_v21 = vsel %vm171_vm8, %v164_v9, %v166_v18  ;;  %v287_v57 = vcvt.s32.f32 %v283_v52 }
 0x269   :  { %v185_v22 = vadd.f32 %v174_v21, %v160_v2  ;;  %v186_v23 = vadd.f32 %v173_v20, %v161_v3  ;;  %v285_v9 = vadd.s32 1, %v62_v54  ;;  %v545_v18 = vadd.f32 -1.0, %v286_v56 }
 0x26a   :  { %194 = vrot.lane.b32.xlu0 %v187_v19, %s640_s18  ;;  %v546_v25 = vadd.f32 -1.0, %v287_v57 }
 0x26b   :  { %192 = vrot.lane.b32.xlu1 %v186_v23, %s640_s18 }
 0x26c   :  { %190 = vrot.lane.b32.xlu2 %v185_v22, %s640_s18 }
 0x2be   :  { %v189_v24 = vpop.permute.xlu2 %188 }
 0x2c6   :  { %v191_v27 = vpop.permute.xlu2 %190 }
 0x2c7   :  { %v199_v28 = vsel %vm196_vm11, %v189_v24, %v191_v27 }
 0x2c8   :  { %v210_v29 = vadd.f32 %v199_v28, %v185_v22 }
 0x2ca   :  { %215 = vrot.lane.b32.xlu2 %v210_v29, %s643_s21 }
 0x2d2   :  { %296 = vperm.xlu2 %562, %v57_v30   ;;  %v49_v30 = vand.u32 4294967294, %v665_v1  ;;  %v52_v1 = vand.u32 4294967294, %v671_v5 }
 0x2dc   :  { %v195_v32 = vpop.permute.xlu0 %194 }
 0x2dd   :  { %v200_v33 = vsel %vm196_vm11, %v195_v32, %v189_v24  ;;  %v193_v34 = vpop.permute.xlu1 %192  ;;  %v289_v24 = vcvt.s32.f32 %v285_v9 }
 0x2de   :  { %v205_v35 = vsel %vm201_vm13, %v200_v33, 0.0  ;;  %v197_v36 = vsel %vm196_vm11, %v193_v34, %v195_v32  ;;  %v198_v39 = vsel %vm196_vm11, %v191_v27, %v193_v34  ;;  %v50_v32 = vand.u32 4294967294, %v669_v4 }
 0x2df   :  { %v209_v37 = vadd.f32 %v205_v35, %v184_v14  ;;  %v212_v38 = vadd.f32 %v197_v36, %v187_v19  ;;  %v211_v41 = vadd.f32 %v198_v39, %v186_v23  ;;  %v288_v23 = vcvt.s32.f32 %v284_v8 }
 0x2e0   :  { %v548_v36 = vadd.f32 -1.0, %v289_v24 }
 0x2e1   :  { %213 = vrot.lane.b32.xlu0 %v209_v37, %s643_s21  ;;  %219 = vrot.lane.b32.xlu1 %v212_v38, %s643_s21 }
 0x2e9   :  { %217 = vrot.lane.b32.xlu0 %v211_v41, %s643_s21  ;;  %265 = vperm.xlu1 %561, %v262_v40  }
 0x324   :  { %v216_v42 = vpop.permute.xlu2 %215 }
 0x32c   :  { %v752_v17 = vpop.permute.xlu2 %296 }
 0x353   :  { %v214_v44 = vpop.permute.xlu0 %213  ;;  %v220_v45 = vpop.permute.xlu1 %219 }
 0x354   :  { %v224_v46 = vsel %vm221_vm14, %v214_v44, %v216_v42  ;;  %v225_v47 = vsel %vm221_vm14, %v220_v45, %v214_v44 }
 0x355   :  { %v230_v48 = vsel %vm226_vm15, %v225_v47, 0.0  ;;  %v235_v49 = vadd.f32 %v224_v46, %v210_v29 }
 0x356   :  { %v234_v50 = vadd.f32 %v230_v48, %v209_v37 }
 0x358   :  { %v247_v55 = vadd.f32 %v235_v49, %v234_v50 }
 0x35b   :  { %v218_v58 = vpop.permute.xlu0 %217  ;;  %v266_v59 = vpop.permute.xlu1 %265 }
 0x35c   :  { %v222_v60 = vsel %vm221_vm14, %v218_v58, %v220_v45  ;;  %v223_v61 = vsel %vm221_vm14, %v216_v42, %v218_v58  ;;  %v746_v62 = vadd.f32 %v266_v59, %v234_v50  ;;  %v748_v63 = vadd.f32 %v266_v59, %v247_v55 }
 0x35d   :  { %v236_v2 = vadd.f32 %v223_v61, %v211_v41  ;;  %v237_v3 = vadd.f32 %v222_v60, %v212_v38 }
 0x35e   :  { %v303_v12 = vsub.f32 %v286_v56, %v746_v62  ;;  %v304_v13 = vsub.f32 %v287_v57, %v748_v63  ;;  %v760_v26 = vsub.f32 %v746_v62, %v675_v7  ;;  %v764_v27 = vsub.f32 %v748_v63, %v683_v10 }
 0x35f   :  { %v248_v14 = vadd.f32 %v236_v2, %v235_v49  ;;  %v249_v16 = vadd.f32 %v237_v3, %v236_v2  ;;  %v547_v10 = vadd.f32 -1.0, %v288_v23  ;;  %v299_v42 = vsub.f32 %v752_v17, %v746_v62 }
 0x360   :  { %v307_v19 = vadd.f32 %v303_v12, %v752_v17  ;;  %v756_v20 = vadd.f32 %v304_v13, %v752_v17  ;;  %v379_v34 = vsub.f32 %v545_v18, %v760_v26  ;;  %v380_v35 = vsub.f32 %v546_v25, %v764_v27 }
 0x361   :  { %v260_v21 = vadd.f32 %v248_v14, %v234_v50  ;;  %v261_v22 = vadd.f32 %v249_v16, %v247_v55  ;;  %v300_v43 = vsub.f32 %v752_v17, %v748_v63  ;;  %v375_v44 = vsub.f32 %v752_v17, %v760_v26 }
 0x362   :  { %564 = vrcp.f32 %v307_v19  ;;  %v320_v39 = vand.u32 2147483647, %v307_v19  ;;  %v322_v40 = vand.u32 2147483648, %v307_v19  ;;  %v376_v45 = vsub.f32 %v752_v17, %v764_v27 }
 0x363   :  { %v766_v28 = vadd.f32 %v266_v59, %v260_v21  ;;  %v768_v29 = vadd.f32 %v266_v59, %v261_v22  ;;  %566 = vrcp.f32 %v756_v20  ;;  %vm316_vm0 = vweird.f32 %v307_v19 }
 0x364   :  { %vm331_vm1 = vweird.f32 %v756_v20  ;;  %v805_v51 = vadd.f32 %v379_v34, %v752_v17  ;;  %vm807_vm2 = vcmp.eq.f32.partialorder %v320_v39, 8.507059e+37  ;;  %v335_v56 = vand.u32 2147483647, %v756_v20 }
 0x365   :  { %v305_v33 = vsub.f32 %v288_v23, %v766_v28  ;;  %v306_v7 = vsub.f32 %v289_v24, %v768_v29  ;;  %484 = vrot.lane.b32.xlu1 %v768_v29, %s635_s1  ;;  %v795_v47 = vsub.f32 %v766_v28, %v673_v6  ;;  %v799_v48 = vsub.f32 %v768_v29, %v685_v11 }
 0x366   :  { %v323_v6 = vor.u32 1.1754944e-38, %v322_v40  ;;  %v813_v11 = vadd.f32 %v380_v35, %v752_v17  ;;  %v301_v54 = vsub.f32 %v752_v17, %v766_v28  ;;  %v337_v57 = vand.u32 2147483648, %v756_v20 }
 0x367   :  { %v780_v37 = vadd.f32 %v305_v33, %v752_v17  ;;  %v783_v38 = vadd.f32 %v306_v7, %v752_v17  ;;  %v381_v58 = vsub.f32 %v547_v10, %v795_v47  ;;  %v382_v60 = vsub.f32 %v548_v36, %v799_v48 }
 0x368   :  { %v565_v41 = vpop.eup %564  ;;  %vm833_vm6 = vcmp.eq.f32.partialorder %v335_v56, 8.507059e+37  ;;  %v338_v18 = vor.u32 1.1754944e-38, %v337_v57  ;;  %v377_v24 = vsub.f32 %v752_v17, %v795_v47  ;;  %vm392_vm12 = vweird.f32 %v805_v51 }
 0x369   :  { %v567_v46 = vpop.eup %566  ;;  %v312_v49 = vmul.f32 %v565_v41, %v307_v19  ;;  %568 = vrcp.f32 %v780_v37  ;;  %vm317_vm3 = vweird.f32 %v565_v41  ;;  %v350_v2 = vand.u32 2147483647, %v780_v37 }
 0x36a   :  { %v327_v50 = vmul.f32 %v567_v46, %v756_v20  ;;  %570 = vrcp.f32 %v783_v38  ;;  %vm332_vm4 = vweird.f32 %v567_v46  ;;  %v352_v9 = vand.u32 2147483648, %v780_v37  ;;  %vm829_vm5 = vmor %vm316_vm0, %vm317_vm3 }
 0x36b   :  { %v313_v52 = vsub.f32 1.0, %v312_v49  ;;  %572 = vrcp.f32 %v805_v51  ;;  %v367_v12 = vand.u32 2147483648, %v783_v38  ;;  %vm846_vm7 = vmor %vm331_vm1, %vm332_vm4  ;;  %vm346_vm8 = vweird.f32 %v780_v37 }
 0x36c   :  { %v328_v55 = vsub.f32 1.0, %v327_v50  ;;  %574 = vrcp.f32 %v813_v11  ;;  %v854_v25 = vadd.f32 %v381_v58, %v752_v17  ;;  %vm361_vm9 = vweird.f32 %v783_v38 }
 0x36d   :  { %v314_v59 = vmul.f32 %v565_v41, %v313_v52  ;;  %v365_v20 = vand.u32 2147483647, %v783_v38  ;;  %vm862_vm11 = vcmp.eq.f32.partialorder %v350_v2, 8.507059e+37  ;;  %v353_v35 = vor.u32 1.1754944e-38, %v352_v9 }
 0x36e   :  { %v329_v61 = vmul.f32 %v567_v46, %v328_v55  ;;  %v866_v36 = vor.u32 1.1754944e-38, %v367_v12  ;;  %v869_v39 = vadd.f32 %v382_v60, %v752_v17  ;;  %v396_v50 = vand.u32 2147483647, %v805_v51 }
 0x36f   :  { %v823_v3 = vpop.eup %568  ;;  %v315_v8 = vadd.f32 %v565_v41, %v314_v59  ;;  %576 = vrcp.f32 %v854_v25  ;;  %vm407_vm14 = vweird.f32 %v813_v11  ;;  %vm902_vm1 = vcmp.eq.f32.partialorder %v365_v20, 8.507059e+37 }
 0x370   :  { %v330_v14 = vadd.f32 %v567_v46, %v329_v61  ;;  %v342_v21 = vmul.f32 %v823_v3, %v780_v37  ;;  %v839_v22 = vpop.eup %570  ;;  %vm347_vm13 = vweird.f32 %v823_v3  ;;  %v411_v61 = vand.u32 2147483647, %v813_v11 }
 0x371   :  { %v319_v23 = vsel %vm829_vm5, %v565_v41, %v315_v8  ;;  %v357_v10 = vmul.f32 %v839_v22, %v783_v38  ;;  %v573_v40 = vpop.eup %572  ;;  %vm897_vm15 = vmor %vm346_vm8, %vm347_vm13  ;;  %vm362_vm0 = vweird.f32 %v839_v22  ;;  %v413_v9 = vand.u32 2147483648, %v813_v11 }
 0x372   :  { %v334_v33 = vsel %vm846_vm7, %v567_v46, %v330_v14  ;;  %v343_v7 = vsub.f32 1.0, %v342_v21  ;;  %v324_v41 = vsel %vm807_vm2, %v323_v6, %v319_v23  ;;  %v575_v52 = vpop.eup %574  ;;  %v388_v56 = vmul.f32 %v573_v40, %v805_v51  ;;  %vm918_vm5 = vmor %vm361_vm9, %vm362_vm0 }
 0x373   :  { %v358_v49 = vsub.f32 1.0, %v357_v10  ;;  %v339_v55 = vsel %vm833_vm6, %v338_v18, %v334_v33  ;;  %v398_v6 = vand.u32 2147483648, %v805_v51  ;;  %v403_v58 = vmul.f32 %v575_v52, %v813_v11 }
 0x374   :  { %v344_v46 = vmul.f32 %v823_v3, %v343_v7  ;;  %v888_v59 = vmul.f32 %v324_v41, %v299_v42  ;;  %v389_v60 = vsub.f32 1.0, %v388_v56  ;;  %v340_v2 = vmul.f32 %v339_v55, %v300_v43 }
 0x375   :  { %v359_v53 = vmul.f32 %v839_v22, %v358_v49  ;;  %v404_v42 = vsub.f32 1.0, %v403_v58  ;;  %vm393_vm2 = vweird.f32 %v573_v40  ;;  %578 = vrcp.f32 %v869_v39  ;;  %v577_v14 = vpop.eup %576 }
 0x376   :  { %v345_v57 = vadd.f32 %v823_v3, %v344_v46  ;;  %v390_v43 = vmul.f32 %v573_v40, %v389_v60  ;;  %vm912_vm3 = vcmp.eq.f32.partialorder %v396_v50, 8.507059e+37  ;;  %vm408_vm4 = vweird.f32 %v575_v52  ;;  %vm394_vm7 = vmor %vm392_vm12, %vm393_vm2 }
 0x377   :  { %v360_v37 = vadd.f32 %v839_v22, %v359_v53  ;;  %v405_v13 = vmul.f32 %v575_v52, %v404_v42  ;;  %v399_v21 = vor.u32 1.1754944e-38, %v398_v6  ;;  %vm923_vm6 = vcmp.eq.f32.partialorder %v411_v61, 8.507059e+37  ;;  %vm409_vm8 = vmor %vm407_vm14, %vm408_vm4 }
 0x378   :  { %v349_v63 = vsel %vm897_vm15, %v823_v3, %v345_v57  ;;  %v371_v3 = vsub.f32 1.0, %v888_v59  ;;  %v391_v18 = vadd.f32 %v573_v40, %v390_v43  ;;  %v372_v33 = vsub.f32 1.0, %v340_v2 }
 0x379   :  { %v354_v19 = vsel %vm862_vm11, %v353_v35, %v349_v63  ;;  %v406_v38 = vadd.f32 %v575_v52, %v405_v13  ;;  %v418_v7 = vmul.f32 %v577_v14, %v854_v25  ;;  %v414_v20 = vor.u32 1.1754944e-38, %v413_v9 }
 0x37a   :  { %v395_v10 = vsel %vm394_vm7, %v573_v40, %v391_v18  ;;  %v426_v41 = vand.u32 2147483647, %v854_v25  ;;  %v428_v46 = vand.u32 2147483648, %v854_v25  ;;  %v364_v34 = vsel %vm918_vm5, %v839_v22, %v360_v37 }
 0x37b   :  { %v400_v51 = vsel %vm912_vm3, %v399_v21, %v395_v10  ;;  %v410_v35 = vsel %vm409_vm8, %v575_v52, %v406_v38  ;;  %v419_v49 = vsub.f32 1.0, %v418_v7  ;;  %v579_v50 = vpop.eup %578  ;;  %v355_v11 = vmul.f32 %v354_v19, %v301_v54  ;;  %v470_v10 = vld [vmem:[#allocation3] sm:$0xff] }
 0x37c   :  { %v401_v40 = vmul.f32 %v400_v51, %v375_v44  ;;  %v415_v55 = vsel %vm923_vm6, %v414_v20, %v410_v35  ;;  %vm422_vm9 = vweird.f32 %v854_v25  ;;  %vm423_vm11 = vweird.f32 %v577_v14 }
 0x37d   :  { %v416_v22 = vmul.f32 %v415_v55, %v376_v45  ;;  %v420_v52 = vmul.f32 %v577_v14, %v419_v49  ;;  %v433_v56 = vmul.f32 %v579_v50, %v869_v39  ;;  %v369_v28 = vsel %vm902_vm1, %v866_v36, %v364_v34  ;;  %vm424_vm14 = vmor %vm422_vm9, %vm423_vm11 }
 0x37e   :  { %vm957_vm12 = vcmp.eq.f32.partialorder %v426_v41, 8.507059e+37  ;;  %v447_v44 = vsub.f32 1.0, %v401_v40  ;;  %vm451_vm13 = vcmp.eq.s32.totalorder %v691_v15, 0  ;;  %v429_v25 = vor.u32 1.1754944e-38, %v428_v46 }
 0x37f   :  { %v421_v54 = vadd.f32 %v577_v14, %v420_v52  ;;  %v434_v57 = vsub.f32 1.0, %v433_v56  ;;  %v448_v27 = vsub.f32 1.0, %v416_v22  ;;  %vm438_vm15 = vweird.f32 %v579_v50 }
 0x380   :  { %v441_v45 = vand.u32 2147483647, %v869_v39  ;;  %v443_v53 = vand.u32 2147483648, %v869_v39  ;;  %v462_v6 = vsel %vm451_vm13, 0.0, %v447_v44  ;;  %v51_v61 = vand.u32 4294967294, %v663_v0 }
 0x381   :  { %v425_v58 = vsel %vm424_vm14, %v577_v14, %v421_v54  ;;  %v435_v36 = vmul.f32 %v579_v50, %v434_v57  ;;  %v466_v59 = vsub.f32 %v371_v3, %v462_v6  ;;  %v467_v60 = vsub.f32 %v372_v33, %v448_v27 }
 0x382   :  { %v302_v15 = vsub.f32 %v752_v17, %v768_v29  ;;  %v430_v2 = vsel %vm957_vm12, %v429_v25, %v425_v58  ;;  %vm437_vm0 = vweird.f32 %v869_v39  ;;  %v373_v63 = vsub.f32 1.0, %v355_v11 }
 0x383   :  { %v431_v8 = vmul.f32 %v430_v2, %v377_v24  ;;  %v436_v62 = vadd.f32 %v579_v50, %v435_v36  ;;  %v471_v42 = vmul.f32 %v466_v59, %v49_v30  ;;  %v472_v9 = vmul.f32 %v467_v60, %v50_v32  ;;  %vm439_vm1 = vmor %vm437_vm0, %vm438_vm15 }
 0x384   :  { %v370_v0 = vmul.f32 %v369_v28, %v302_v15  ;;  %v378_v29 = vsub.f32 %v752_v17, %v799_v48  ;;  %v444_v43 = vor.u32 1.1754944e-38, %v443_v53  ;;  %vm442_vm2 = vcmp.eq.f32.partialorder %v441_v45, 8.507059e+37 }
 0x385   :  { %v440_v39 = vsel %vm439_vm1, %v579_v50, %v436_v62  ;;  %v449_v37 = vsub.f32 1.0, %v431_v8  ;;  %v475_v47 = vadd.f32 %v472_v9, %v471_v42  ;;  %v503_v48 = vsel %vm30_vm10, %v723_v31, 0.0 }
 0x386   :  { %v445_v24 = vsel %vm442_vm2, %v444_v43, %v440_v39  ;;  %v374_v30 = vsub.f32 1.0, %v370_v0  ;;  %v504_v21 = vrot.slane %v503_v48, 4 }
 0x387   :  { %v446_v12 = vmul.f32 %v445_v24, %v378_v29  ;;  %v468_v13 = vsub.f32 %v373_v63, %v449_v37 }
 0x388   :  { %v505_v23 = vadd.f32 %v504_v21, %v503_v48 }
 0x389   :  { %v450_v4 = vsub.f32 1.0, %v446_v12  ;;  %v473_v32 = vmul.f32 %v468_v13, %v51_v61 }
 0x38a   :  { %v506_v19 = vrot.slane %v505_v23, 2 }
 0x38b   :  { %v469_v14 = vsub.f32 %v374_v30, %v450_v4  ;;  %v476_v16 = vadd.f32 %v475_v47, %v473_v32 }
 0x38c   :  { %v507_v33 = vadd.f32 %v506_v19, %v505_v23 }
 0x38d   :  { %v474_v3 = vmul.f32 %v469_v14, %v52_v1 }
 0x38e   :  { %v508_v38 = vrot.slane %v507_v33, 1 }
 0x38f   :  { %v477_v18 = vadd.f32 %v476_v16, %v474_v3 }
 0x390   :  { %v509_v5 = vadd.f32 %v508_v38, %v507_v33 }
 0x391   :  { %478 = vadd.xlane.f32.xlu0 %v477_v18 }
 0x392   :  { %v510_v7 = vmax.f32 %v509_v5, 1.0 }
 0x394   :  { %580 = vrcp.f32 %v510_v7  ;;  %vm516_vm3 = vweird.f32 %v510_v7  ;;  %v522_v55 = vand.u32 2147483648, %v510_v7  ;;  %v520_v56 = vand.u32 2147483647, %v510_v7 }
 0x396   :  { %v523_v26 = vor.u32 1.1754944e-38, %v522_v55  ;;  %vm521_vm6 = vcmp.eq.f32.partialorder %v520_v56, 8.507059e+37 }
 0x39a   :  { %v581_v41 = vpop.eup %580 }
 0x39b   :  { %v512_v34 = vmul.f32 %v581_v41, %v510_v7  ;;  %vm517_vm4 = vweird.f32 %v581_v41 }
 0x39c   :  { %vm518_vm5 = vmor %vm516_vm3, %vm517_vm4 }
 0x39d   :  { %v513_v51 = vsub.f32 1.0, %v512_v34 }
 0x39f   :  { %v514_v50 = vmul.f32 %v581_v41, %v513_v51 }
 0x3a1   :  { %v515_v52 = vadd.f32 %v581_v41, %v514_v50 }
 0x3a3   :  { %v519_v54 = vsel %vm518_vm5, %v581_v41, %v515_v52 }
 0x3a4   :  { %v524_v57 = vsel %vm521_vm6, %v523_v26, %v519_v54 }
 0x3d7   :  { %v485_v17 = vpop.permute.xlu1 %484 }
 0x3d8   :  { %487 = vst.msk [vmem:[#allocation2] sm:$0xff] %vm30_vm10, %v485_v17 }
 0x404   :  { %v479_v20 = vpop.xlane.xlu0 %478 }
 0x405   :  { %v480_v46 = vadd.f32 %v479_v20, %v470_v10 }
 0x407   :  { %482 = vst.msk [vmem:[#allocation3] sm:$0xff] %vm30_vm10, %v480_v46 }
 0x40e   :  { %v491_v35 = vld [vmem:[#allocation3] sm:$0xff] }
 0x40f   :  { %v495_v49 = vmul.f32 %v723_v31, %v491_v35 }
 0x411   :  { %v496_v11 = vsel %vm30_vm10, %v495_v49, 0.0  ;;  %vm526_vm10 = vcmask 0  }
 0x412   :  { %v497_v40 = vrot.slane %v496_v11, 4 }
 0x414   :  { %v498_v22 = vadd.f32 %v497_v40, %v496_v11 }
 0x416   :  { %v499_v28 = vrot.slane %v498_v22, 2 }
 0x418   :  { %v500_v44 = vadd.f32 %v499_v28, %v498_v22 }
 0x41a   :  { %v501_v25 = vrot.slane %v500_v44, 1 }
 0x41c   :  { %v502_v31 = vadd.f32 %v501_v25, %v500_v44 }
 0x41e   :  { %v525_v27 = vmul.f32 %v524_v57, %v502_v31 }
 0x420   :  { %527 = vst.msk [vmem:[#allocation7] sm:$0x1] %vm526_vm10, %v525_v27 }
 0x421   :  { %538 = dma.vmem_to_hbm [thread:$0]  %s534_s22, 16, %s536_s25, [#allocation6]  }
 0x422   :  { %632 = dma.done.wait [#allocation6], 16  }
 0x423   :  { %633 = vsyncadd [#allocation6], 4294967280 }
 0x424   :  { %543 = vsyncpa [#allocation5], 1 }
 0x425   :  { %544 = vsyncpa [#allocation6], 1 }

</bundles_post_ra>
